<compile_context>
chip_gen: v6e
topology: v6e:2x2x1
jax: 0.10.0
libtpu: 0.0.40
codegen_flags: <defaults>
</compile_context>

<pallas_src>
from functools import partial

import jax
import jax.numpy as jnp
from jax.experimental import pallas as pl
from jax.experimental.pallas import tpu as pltpu


def _round_up(n, m):
    return ((n + m - 1) // m) * m


def attention_kernel(x_ref, w_ref, b1_ref, b2_ref, o_ref, *, Lp, C):
    # x_ref : (TB, L*E)        lane-dense input block (f32 or bf16)
    # w_ref : (L*E, Lp*C + 1)  fused weight [block-diag per-row conv | score matvec]
    # b1_ref: (1,)             attention-conv bias, scalar in SMEM
    # b2_ref: (1, C)           per-channel conv bias
    # o_ref : (TB, C)
    x = x_ref[...]

    # Single MXU pass for everything that touches x.
    z = jnp.dot(x, w_ref[...], preferred_element_type=jnp.float32)   # (TB, Lp*C + 1)

    # Per-sample attention score (last fused column).
    score = jax.nn.sigmoid(z[:, Lp * C:Lp * C + 1] + b1_ref[0])       # (TB, 1)

    # MaxPool2d((L,1)) over the Lp row-groups (column = l*C + c).  tanh is monotone and
    # score > 0, so max commutes with the whole epilogue: reduce first (log2 tree over
    # power-of-two halves), then do the cheap (TB, C) scale/bias/tanh.
    a = z[:, :Lp * C]
    width = Lp * C
    while width > C:
        half = width // 2
        a = jnp.maximum(a[:, :half], a[:, half:width])
        width = half

    o_ref[...] = jnp.tanh(a * score + b2_ref[...]).astype(o_ref.dtype)


def attention_forward(x, w1, b1, w2, b2, *, block_b=2048):
    """x: (B, L, E). Returns (B, C, 1, 1) matching the PyTorch module output."""
    B, L, E = x.shape
    C = w2.shape[0]

    # Keep bf16 inputs in bf16 (HBM-bound kernel); everything else runs in f32.
    compute_dtype = jnp.bfloat16 if x.dtype == jnp.bfloat16 else jnp.float32
    itemsize = jnp.dtype(compute_dtype).itemsize

    # --- batch tiling -------------------------------------------------------
    B8 = _round_up(B, 8)
    # Cap TB so the double-buffered x window stays <= ~8 MiB (fits v5e's 16 MiB default).
    row_bytes = L * E * itemsize
    tb_cap = max(8, ((8 << 20) // (2 * row_bytes)) // 8 * 8)
    block_b = min(_round_up(block_b, 8), tb_cap)

    want_blocks = pl.cdiv(B8, block_b)
    if B8 >= 16:
        # v7x megacore: "parallel" only shards across the 2 TCs with >= 2 grid steps.
        want_blocks = max(want_blocks, 2)
    TB = _round_up(pl.cdiv(B8, want_blocks), 8)   # balanced split, no near-empty tail block
    grid_b = pl.cdiv(B8, TB)
    B_pad = TB * grid_b

    # --- wrapper-side (XLA) layout prep: cheap, one-time ---------------------
    x_flat = jnp.reshape(x, (B, L * E)).astype(compute_dtype)         # lane-dense x
    if B_pad != B:
        x_flat = jnp.pad(x_flat, ((0, B_pad - B), (0, 0)))            # zero pad (sliced off)

    # Pad row-groups to a power of two so the in-kernel max is a clean halving tree.
    Lp = pl.next_power_of_2(L)
    # sel[l, k] = 1 iff fused column-group k reads input row l; padded groups duplicate
    # group 0 (a no-op under max).
    sel = jnp.eye(L, dtype=jnp.float32)
    if Lp > L:
        dup = jnp.zeros((L, Lp - L), jnp.float32).at[0, :].set(1.0)
        sel = jnp.concatenate([sel, dup], axis=1)
    # Block-diagonal per-row conv weight: W2big[l*E+e, k*C+c] = w2[c, e] * sel[l, k].
    w2_big = jnp.einsum("ec,lk->lekc", jnp.transpose(w2).astype(jnp.float32),
                        sel).reshape(L * E, Lp * C)
    w1_col = jnp.reshape(w1, (L * E, 1)).astype(jnp.float32)
    w_fused = jnp.concatenate([w2_big, w1_col], axis=1).astype(compute_dtype)
    b1_s = jnp.reshape(b1, (1,)).astype(jnp.float32)
    b2_r = jnp.reshape(b2, (1, C)).astype(jnp.float32)

    kernel = partial(attention_kernel, Lp=Lp, C=C)

    # Real work only (block-diagonal zeros not counted).
    flops = 2 * B_pad * L * E * (C + 1) + B_pad * (Lp * C + 4 * C)
    transcendentals = B_pad * (1 + C)
    bytes_accessed = (itemsize * (B_pad * L * E + L * E * (Lp * C + 1))
                      + 4 * (B_pad * C + C + 1))

    out = pl.pallas_call(
        kernel,
        out_shape=jax.ShapeDtypeStruct((B_pad, C), jnp.float32),
        grid_spec=pltpu.PrefetchScalarGridSpec(
            num_scalar_prefetch=0,
            grid=(grid_b,),
            in_specs=[
                pl.BlockSpec((TB, L * E), lambda b: (b, 0)),          # x (only big operand)
                pl.BlockSpec((L * E, Lp * C + 1), lambda b: (0, 0)),  # fused weight (resident)
                pl.BlockSpec(memory_space=pltpu.MemorySpace.SMEM),    # b1 scalar in SMEM
                pl.BlockSpec((1, C), lambda b: (0, 0)),               # b2 (resident)
            ],
            out_specs=pl.BlockSpec((TB, C), lambda b: (b, 0)),
        ),
        compiler_params=pltpu.CompilerParams(
            dimension_semantics=("parallel",)),
        cost_estimate=pl.CostEstimate(
            flops=flops,
            transcendentals=transcendentals,
            bytes_accessed=bytes_accessed),
    )(x_flat, w_fused, b1_s, b2_r)

    return out[:B].reshape(B, C, 1, 1)


def reference_forward(x, w1, b1, w2, b2):
    """Pure-JAX reference matching the PyTorch forward."""
    score = jax.nn.sigmoid(jnp.sum(x * w1[None], axis=(1, 2)) + b1)      # (B,)
    xw = x * score[:, None, None]                                        # (B, L, E)
    logits = jnp.einsum("ble,ce->blc", xw, w2) + b2[None, None, :]       # (B, L, C)
    y = jnp.tanh(logits)
    out = jnp.max(y, axis=1)                                             # (B, C)
    return out.reshape(x.shape[0], w2.shape[0], 1, 1)


if __name__ == "__main__":
    # small shapes consistent with the module
    B = 2            # batch
    L = 8            # input_size (sequence length)
    E = 32           # embed_size
    C = 4            # out_channels

    key = jax.random.PRNGKey(0)
    kx, kw1, kb1, kw2, kb2 = jax.random.split(key, 5)

    x = jax.random.normal(kx, (B, L, E), dtype=jnp.float32)

    # Deterministic parameter init (PyTorch Conv2d default: U(-1/sqrt(fan_in), 1/sqrt(fan_in)))
    fan1 = L * E
    w1 = jax.random.uniform(kw1, (L, E), jnp.float32,
                            minval=-1.0 / jnp.sqrt(fan1), maxval=1.0 / jnp.sqrt(fan1))
    b1 = jax.random.uniform(kb1, (), jnp.float32,
                            minval=-1.0 / jnp.sqrt(fan1), maxval=1.0 / jnp.sqrt(fan1))
    fan2 = E
    w2 = jax.random.uniform(kw2, (C, E), jnp.float32,
                            minval=-1.0 / jnp.sqrt(fan2), maxval=1.0 / jnp.sqrt(fan2))
    b2 = jax.random.uniform(kb2, (C,), jnp.float32,
                            minval=-1.0 / jnp.sqrt(fan2), maxval=1.0 / jnp.sqrt(fan2))

    out = attention_forward(x, w1, b1, w2, b2)
    out = jax.block_until_ready(out)

    ref = reference_forward(x, w1, b1, w2, b2)
    assert out.shape == (B, C, 1, 1), out.shape
    assert jnp.allclose(out, ref, atol=1e-5, rtol=1e-5), (out, ref)

    print("KERNEL_OK")
</pallas_src>

<mosaic_0001>
module attributes {stable_mosaic.version = 11 : i64} {
  func.func @attention_kernel(%arg0: i32, %arg1: memref<8x256xf32, #tpu.memory_space<vmem>>, %arg2: memref<256x33xf32, #tpu.memory_space<vmem>>, %arg3: memref<1xf32, #tpu.memory_space<smem>>, %arg4: memref<1x4xf32, #tpu.memory_space<vmem>>, %arg5: memref<8x4xf32, #tpu.memory_space<vmem>>) attributes {dimension_semantics = [#tpu.dimension_semantics<parallel>], iteration_bounds = array<i64: 1>, scalar_prefetch = 0 : i64, scratch_operands = 0 : i64, tpu.core_type = #tpu.core_type<tc>, window_params = [{transform_indices = @transform_0, window_bounds = array<i64: 8, 256>}, {pipeline_mode = #tpu.pipeline_mode<synchronous>, transform_indices = @transform_1, window_bounds = array<i64: 256, 33>}, {transform_indices = @transform_2, window_bounds = array<i64: 1>}, {pipeline_mode = #tpu.pipeline_mode<synchronous>, transform_indices = @transform_3, window_bounds = array<i64: 1, 4>}, {transform_indices = @transform_4, window_bounds = array<i64: 8, 4>}]} {
    %c0 = arith.constant 0 : index
    %c0_0 = arith.constant 0 : index
    %0 = vector.load %arg1[%c0, %c0_0] : memref<8x256xf32, #tpu.memory_space<vmem>>, vector<8x256xf32>
    %c0_1 = arith.constant 0 : index
    %c0_2 = arith.constant 0 : index
    %1 = vector.load %arg2[%c0_1, %c0_2] : memref<256x33xf32, #tpu.memory_space<vmem>>, vector<256x33xf32>
    %cst = arith.constant dense<0.000000e+00> : vector<8x33xf32>
    %2 = tpu.matmul %0, %1, %cst {dimension_numbers = #tpu.dot_dimension_numbers<[1], [0], [0], [1], [0, 0, 1, 1], [], []>} : vector<8x256xf32>, vector<256x33xf32>, vector<8x33xf32> -> vector<8x33xf32>
    %3 = vector.extract_strided_slice %2 {offsets = [0, 32], sizes = [8, 1], strides = [1, 1]} : vector<8x33xf32> to vector<8x1xf32>
    %c0_3 = arith.constant 0 : index
    %4 = memref.load %arg3[%c0_3] : memref<1xf32, #tpu.memory_space<smem>>
    %5 = vector.broadcast %4 : f32 to vector<8x1xf32>
    %6 = arith.addf %3, %5 : vector<8x1xf32>
    %7 = arith.negf %6 : vector<8x1xf32>
    %8 = math.exp %7 : vector<8x1xf32>
    %cst_4 = arith.constant 1.000000e+00 : f32
    %9 = vector.broadcast %cst_4 : f32 to vector<8x1xf32>
    %10 = arith.addf %9, %8 : vector<8x1xf32>
    %11 = arith.divf %9, %10 : vector<8x1xf32>
    %12 = vector.extract_strided_slice %2 {offsets = [0, 0], sizes = [8, 32], strides = [1, 1]} : vector<8x33xf32> to vector<8x32xf32>
    %13 = vector.extract_strided_slice %12 {offsets = [0, 0], sizes = [8, 16], strides = [1, 1]} : vector<8x32xf32> to vector<8x16xf32>
    %14 = vector.extract_strided_slice %12 {offsets = [0, 16], sizes = [8, 16], strides = [1, 1]} : vector<8x32xf32> to vector<8x16xf32>
    %15 = arith.maximumf %13, %14 : vector<8x16xf32>
    %16 = vector.extract_strided_slice %15 {offsets = [0, 0], sizes = [8, 8], strides = [1, 1]} : vector<8x16xf32> to vector<8x8xf32>
    %17 = vector.extract_strided_slice %15 {offsets = [0, 8], sizes = [8, 8], strides = [1, 1]} : vector<8x16xf32> to vector<8x8xf32>
    %18 = arith.maximumf %16, %17 : vector<8x8xf32>
    %19 = vector.extract_strided_slice %18 {offsets = [0, 0], sizes = [8, 4], strides = [1, 1]} : vector<8x8xf32> to vector<8x4xf32>
    %20 = vector.extract_strided_slice %18 {offsets = [0, 4], sizes = [8, 4], strides = [1, 1]} : vector<8x8xf32> to vector<8x4xf32>
    %21 = arith.maximumf %19, %20 : vector<8x4xf32>
    %22 = vector.broadcast %11 : vector<8x1xf32> to vector<8x4xf32>
    %23 = arith.mulf %21, %22 : vector<8x4xf32>
    %c0_5 = arith.constant 0 : index
    %c0_6 = arith.constant 0 : index
    %24 = vector.load %arg4[%c0_5, %c0_6] : memref<1x4xf32, #tpu.memory_space<vmem>>, vector<1x4xf32>
    %25 = vector.broadcast %24 : vector<1x4xf32> to vector<8x4xf32>
    %26 = arith.addf %23, %25 : vector<8x4xf32>
    %27 = math.tanh %26 : vector<8x4xf32>
    %c0_7 = arith.constant 0 : index
    %c0_8 = arith.constant 0 : index
    %28 = vector.load %arg5[%c0_7, %c0_8] : memref<8x4xf32, #tpu.memory_space<vmem>>, vector<8x4xf32>
    tpu.vector_store %arg5[%c0_7, %c0_8], %27 {strides = array<i32>} : memref<8x4xf32, #tpu.memory_space<vmem>>, vector<8x4xf32>,
    return
  }
  func.func @transform_0(%arg0: i32) -> (i32, i32) {
    %c0_i32 = arith.constant 0 : i32
    %c0_i32_0 = arith.constant 0 : i32
    return %arg0, %c0_i32 : i32, i32
  }
  func.func @transform_1(%arg0: i32) -> (i32, i32) {
    %c0_i32 = arith.constant 0 : i32
    %c0_i32_0 = arith.constant 0 : i32
    %c0_i32_1 = arith.constant 0 : i32
    return %c0_i32, %c0_i32_0 : i32, i32
  }
  func.func @transform_2(%arg0: i32) -> i32 {
    %c0_i32 = arith.constant 0 : i32
    %c0_i32_0 = arith.constant 0 : i32
    return %c0_i32 : i32
  }
  func.func @transform_3(%arg0: i32) -> (i32, i32) {
    %c0_i32 = arith.constant 0 : i32
    %c0_i32_0 = arith.constant 0 : i32
    %c0_i32_1 = arith.constant 0 : i32
    return %c0_i32, %c0_i32_0 : i32, i32
  }
  func.func @transform_4(%arg0: i32) -> (i32, i32) {
    %c0_i32 = arith.constant 0 : i32
    %c0_i32_0 = arith.constant 0 : i32
    return %arg0, %c0_i32 : i32, i32
  }
}

</mosaic_0001>

<bundles_post_ra>
// kernel: tpu_custom_call.1
= control target key start
LH: loop header
LB: loop body
LE: loop exit
PB: predicated region body
PF: predicated region fallthrough
CT: control target
= control target key end

     0   :  { %v216_v34 = vmov 32   ;;  %s219_s7 = smov 124   ;;  %vm161_vm0 = vcmask 31744   ;;  %s356_s1 = inlined_call_operand.vmem [shape: f32[256,33], index: 1, kind: input, shape index: {}]   ;;  %s357_s0 = inlined_call_operand.vmem [shape: f32[8,256], index: 0, kind: input, shape index: {}]   ;;  %s358_s2 = inlined_call_operand.<no memory space> [shape: f32[1], index: 2, kind: input, shape index: {}]   ;;  %s359_s3 = inlined_call_operand.vmem [shape: f32[1,4], index: 3, kind: input, shape index: {}]   ;;  %s360_s4 = inlined_call_operand.vmem [shape: f32[8,4], index: 4, kind: output, shape index: {}]  }
   0x1   :  { %v51_v0 = vld [vmem:[%s356_s1 + $0xf8] sm:$0xff]  ;;  %v50_v2 = vld [vmem:[%s356_s1 + $0xf0] sm:$0xff]  ;;  %v49_v4 = vld [vmem:[%s356_s1 + $0xe8] sm:$0xff]  ;;  %208 = vset.pattern.permute.xlu1 %v216_v34  ;;  %209 = vset.pattern.permute.xlu0 %v216_v34  ;;  %v123_v37 = vstv %s358_s2 }
   0x2   :  { %v35_v1 = vld [vmem:[%s356_s1 + $0x78] sm:$0xff]  ;;  %169 = vmatprep.subr.mxu0 %v51_v0  ;;  %v34_v3 = vld [vmem:[%s356_s1 + $0x70] sm:$0xff]  ;;  %v33_v5 = vld [vmem:[%s356_s1 + $0x68] sm:$0xff] }
   0x3   :  { %170 = vmatpush3.msra.mxu0 %v35_v1  ;;  %v48_v6 = vld [vmem:[%s356_s1 + $0xe0] sm:$0xff]  ;;  %v47_v8 = vld [vmem:[%s356_s1 + $0xd8] sm:$0xff]  ;;  %v46_v10 = vld [vmem:[%s356_s1 + $0xd0] sm:$0xff] }
   0x4   :  { %171 = vmatprep.subr.mxu0 %v50_v2  ;;  %v32_v7 = vld [vmem:[%s356_s1 + $0x60] sm:$0xff]  ;;  %v31_v9 = vld [vmem:[%s356_s1 + $0x58] sm:$0xff]  ;;  %v30_v11 = vld [vmem:[%s356_s1 + $0x50] sm:$0xff] }
   0x5   :  { %172 = vmatpush3.msra.mxu0 %v34_v3  ;;  %v45_v12 = vld [vmem:[%s356_s1 + $0xc8] sm:$0xff]  ;;  %v44_v15 = vld [vmem:[%s356_s1 + $0xc0] sm:$0xff]  ;;  %v43_v17 = vld [vmem:[%s356_s1 + $0xb8] sm:$0xff] }
   0x6   :  { %173 = vmatprep.subr.mxu0 %v49_v4  ;;  %v19_v13 = vld [vmem:[%s357_s0 + $0x8] sm:$0xff]  ;;  %v28_v16 = vld [vmem:[%s356_s1 + $0x40] sm:$0xff]  ;;  %v27_v18 = vld [vmem:[%s356_s1 + $0x38] sm:$0xff] }
   0x7   :  { %174 = vmatpush3.msra.mxu0 %v33_v5  ;;  %v29_v14 = vld [vmem:[%s356_s1 + $0x48] sm:$0xff]  ;;  %116 = vmatprep.mubr.f32.mxu0 %v19_v13  ;;  %v42_v19 = vld [vmem:[%s356_s1 + $0xb0] sm:$0xff]  ;;  %v40_v23 = vld [vmem:[%s356_s1 + $0xa0] sm:$0xff] }
   0x8   :  { %175 = vmatprep.subr.mxu0 %v48_v6  ;;  %v26_v20 = vld [vmem:[%s356_s1 + $0x30] sm:$0xff]  ;;  %v41_v21 = vld [vmem:[%s356_s1 + $0xa8] sm:$0xff]  ;;  %v24_v24 = vld [vmem:[%s356_s1 + $0x20] sm:$0xff] }
   0x9   :  { %176 = vmatpush3.msra.mxu0 %v32_v7  ;;  %v25_v22 = vld [vmem:[%s356_s1 + $0x28] sm:$0xff]  ;;  %v39_v25 = vld [vmem:[%s356_s1 + $0x98] sm:$0xff]  ;;  %v38_v27 = vld [vmem:[%s356_s1 + $0x90] sm:$0xff] }
   0xa   :  { %177 = vmatprep.subr.mxu0 %v47_v8  ;;  %v23_v26 = vld [vmem:[%s356_s1 + $0x18] sm:$0xff]  ;;  %v22_v28 = vld [vmem:[%s356_s1 + $0x10] sm:$0xff]  ;;  %v37_v29 = vld [vmem:[%s356_s1 + $0x88] sm:$0xff] }
   0xb   :  { %178 = vmatpush3.msra.mxu0 %v31_v9  ;;  %v21_v30 = vld [vmem:[%s356_s1 + $0x8] sm:$0xff]  ;;  %v36_v31 = vld [vmem:[%s356_s1 + $0x80] sm:$0xff] }
   0xc   :  { %179 = vmatprep.subr.mxu0 %v46_v10  ;;  %v20_v32 = vld [vmem:[%s356_s1] sm:$0xff]  ;;  %s217_s1 = smov 112  }
   0xd   :  { %180 = vmatpush3.msra.mxu0 %v30_v11  ;;  %v18_v33 = vld [vmem:[%s357_s0] sm:$0xff]  ;;  %s218_s0 = smov 120  }
   0xe   :  { %181 = vmatprep.subr.mxu0 %v45_v12  ;;  %v168_v51 = vld [vmem:[%s359_s3] ss:$0 sm:$0xff] }
   0xf   :  { %182 = vmatpush3.msra.mxu0 %v29_v14 }
  0x10   :  { %183 = vmatprep.subr.mxu0 %v44_v15 }
  0x11   :  { %184 = vmatpush3.msra.mxu0 %v28_v16 }
  0x12   :  { %185 = vmatprep.subr.mxu0 %v43_v17 }
  0x13   :  { %186 = vmatpush3.msra.mxu0 %v27_v18 }
  0x14   :  { %187 = vmatprep.subr.mxu0 %v42_v19 }
  0x15   :  { %188 = vmatpush3.msra.mxu0 %v26_v20 }
  0x16   :  { %189 = vmatprep.subr.mxu0 %v41_v21 }
  0x17   :  { %190 = vmatpush3.msra.mxu0 %v25_v22 }
  0x18   :  { %191 = vmatprep.subr.mxu0 %v40_v23 }
  0x19   :  { %192 = vmatpush3.msra.mxu0 %v24_v24 }
  0x1a   :  { %193 = vmatprep.subr.mxu0 %v39_v25 }
  0x1b   :  { %194 = vmatpush3.msra.mxu0 %v23_v26 }
  0x1c   :  { %195 = vmatprep.subr.mxu0 %v38_v27 }
  0x1d   :  { %196 = vmatpush3.msra.mxu0 %v22_v28 }
  0x1e   :  { %197 = vmatprep.subr.mxu0 %v37_v29 }
  0x1f   :  { %198 = vmatpush3.msra.mxu0 %v21_v30 }
  0x20   :  { %199 = vmatprep.subr.mxu0 %v36_v31 }
  0x21   :  { %200 = vmatpush3.msra.mxu0 %v20_v32 }
  0x22   :  { %117 = vmatmul.mubr.f32.vlgmr.msra.gmra.mxu0 %v18_v33 }
  0xe2   :  { %v201_v35 = vpop.f32.mrf.mxu0 }
  0xe4   :  { %v202_v36 = vpop.f32.mrf.mxu0 }
  0xe5   :  { %v203_v38 = vadd.f32 %v202_v36, %v201_v35 }
  0xe7   :  { %v124_v39 = vadd.f32 %v203_v38, %v123_v37  ;;  %132 = vrot.lane.b32.xlu0 %v203_v38, %s217_s1 }
  0xe9   :  { %v167_v40 = vmul.f32 -1.442695, %v124_v39 }
  0xeb   :  { %210 = vpow2.f32 %v167_v40 }
  0xf8   :  { %v211_v41 = vpop.eup %210 }
  0xf9   :  { %v128_v42 = vadd.f32 1.0, %v211_v41 }
  0xfb   :  { %212 = vrcp.f32 %v128_v42 }
 0x108   :  { %v213_v43 = vpop.eup %212 }
 0x109   :  { %148 = vperm.xlu1 %208, %v213_v43  }
 0x159   :  { %v133_v44 = vpop.permute.xlu0 %132 }
 0x15a   :  { %v135_v45 = vmax.f32 %v203_v38, %v133_v44 }
 0x15c   :  { %137 = vrot.lane.b32.xlu0 %v135_v45, %s218_s0 }
 0x184   :  { %v149_v48 = vpop.permute.xlu1 %148 }
 0x1ce   :  { %v138_v46 = vpop.permute.xlu0 %137 }
 0x1cf   :  { %v140_v47 = vmax.f32 %v135_v45, %v138_v46 }
 0x1d1   :  { %142 = vrot.lane.b32.xlu1 %v140_v47, %s219_s7 }
 0x243   :  { %v143_v49 = vpop.permute.xlu1 %142 }
 0x244   :  { %v145_v50 = vmax.f32 %v140_v47, %v143_v49 }
 0x246   :  { %v151_v52 = vmul.f32 %v149_v48, %v145_v50 }
 0x248   :  { %v159_v53 = vadd.f32 %v168_v51, %v151_v52 }
 0x24a   :  { %214 = vtanh.f32 %v159_v53 }
 0x257   :  { %v215_v54 = vpop.eup %214 }
 0x258   :  { %162 = vst.msk [vmem:[%s360_s4] sm:$0xff] %vm161_vm0, %v215_v54 }

</bundles_post_ra>
